<compile_context>
chip_gen: v6e
topology: v6e:2x2x1
jax: 0.10.0
libtpu: 0.0.40
codegen_flags: <defaults>
</compile_context>

<pallas_src>
import functools

import jax
import jax.numpy as jnp
from jax.experimental import pallas as pl
from jax.experimental.pallas import tpu as pltpu

_LANE = 128     # vreg lane width (last dim)
_SUBLANE = 8    # vreg sublane width (second-to-last dim)


def _round_up(x, m):
    return (x + m - 1) // m * m


def _apply_activation(y, activation):
    if activation == "tanh":
        return jnp.tanh(y)
    if activation == "relu":
        return jnp.maximum(y, 0.0)
    if activation == "lrelu":
        return jnp.where(y >= 0.0, y, 0.01 * y)
    if activation == "sigmoid":
        return jax.nn.sigmoid(y)
    if activation == "swish":
        return y * jax.nn.sigmoid(y)
    if activation is None:
        return y
    raise ValueError(f"unknown activation {activation}")


# -----------------------------------------------------------------------------
# Kernel: one batch tile through ALL layers.
#   refs = ( [A_l], Wt_l, b_l  for each layer ... , o_ref )
#     A_l  : (1, in_pad_l)        scaler-folded adaptive slope (adaptive layers)
#     Wt_l : (in_pad_l, out_pad_l) pre-transposed, zero-padded weight
#     b_l  : (1, out_pad_l)        zero-padded bias
#   x_ref : (TB, in_pad_0) batch tile, o_ref : (TB, out_pad_last)
# -----------------------------------------------------------------------------
def fused_mlp_kernel(x_ref, *refs, adaptive_flags, activation):
    n_layers = len(adaptive_flags)
    param_refs = refs[:-1]
    o_ref = refs[-1]

    h = x_ref[...]
    idx = 0
    for li, use_adaptive in enumerate(adaptive_flags):
        if use_adaptive:
            a_ref = param_refs[idx]
            idx += 1
            h = h * a_ref[...]                       # (scaler*A) * x, VPU
        wt_ref = param_refs[idx]
        idx += 1
        b_ref = param_refs[idx]
        idx += 1
        # MXU matmul, contraction directly on the last dim of h / first of Wt.
        h = jnp.dot(h, wt_ref[...], preferred_element_type=jnp.float32)
        h = h + b_ref[...]
        if li < n_layers - 1:                        # hidden layers only
            h = _apply_activation(h, activation)
        # TODO(synk): training-mode dropout (random masking) not implemented;
        # identity at inference / p=0.0.
    o_ref[...] = h.astype(o_ref.dtype)


# -----------------------------------------------------------------------------
# Parameter construction (mirrors PyTorch nn.Linear / AdaptiveLinear).
# -----------------------------------------------------------------------------
def init_mlp_params(key, sizes, adaptive_rate, adaptive_rate_scaler):
    """Raw (unpadded, PyTorch-convention) parameters."""
    if (adaptive_rate is not None) and (adaptive_rate_scaler is None):
        adaptive_rate_scaler = 10.0
    params = []
    n_layers = len(sizes) - 1
    for li, (in_f, out_f) in enumerate(zip(sizes[:-1], sizes[1:])):
        key, kw, kb = jax.random.split(key, 3)
        bound = 1.0 / jnp.sqrt(in_f)     # PyTorch nn.Linear default init range
        W = jax.random.uniform(kw, (out_f, in_f), jnp.float32, -bound, bound)
        b = jax.random.uniform(kb, (out_f,), jnp.float32, -bound, bound)
        is_last = (li == n_layers - 1)   # final AdaptiveLinear has no A
        if (adaptive_rate is not None) and (not is_last):
            A = jnp.full((in_f,), adaptive_rate, dtype=jnp.float32)
        else:
            A = None
        params.append(dict(W=W, b=b, A=A))
    return params, adaptive_rate_scaler


def prepare_mlp_params(params, sizes, adaptive_rate_scaler):
    """One-time host-side transform: transpose, lane-pad, fold scaler into A."""
    layers = []
    for p in params:
        out_f, in_f = p["W"].shape
        in_pad = _round_up(in_f, _LANE)
        out_pad = _round_up(out_f, _LANE)
        Wt = jnp.zeros((in_pad, out_pad), jnp.float32)
        Wt = Wt.at[:in_f, :out_f].set(p["W"].T)
        b = jnp.zeros((1, out_pad), jnp.float32).at[0, :out_f].set(p["b"])
        if p["A"] is not None:
            A = jnp.zeros((1, in_pad), jnp.float32)
            A = A.at[0, :in_f].set(adaptive_rate_scaler * p["A"])
        else:
            A = None
        layers.append(dict(Wt=Wt, b=b, A=A))
    return dict(layers=layers,
                in_features=sizes[0],
                in_pad=_round_up(sizes[0], _LANE),
                out_features=sizes[-1])


# -----------------------------------------------------------------------------
# Wrapper: pad batch, build specs, launch one fused pallas_call.
# -----------------------------------------------------------------------------
def mlp_forward(x, prepared, *, activation, batch_tile=256):
    B, in_f = x.shape
    assert in_f == prepared["in_features"]
    in_pad = prepared["in_pad"]
    layers = prepared["layers"]
    out_f = prepared["out_features"]
    out_pad_last = layers[-1]["Wt"].shape[1]
    adaptive_flags = tuple(l["A"] is not None for l in layers)

    # Batch tiling: sublane-align, then pad to a multiple of the tile.
    B8 = _round_up(B, _SUBLANE)
    TB = min(batch_tile, B8)
    B_pad = _round_up(B8, TB)
    x_pad = jnp.zeros((B_pad, in_pad), jnp.float32).at[:B, :in_f].set(x)

    args = [x_pad]
    in_specs = [pl.BlockSpec((TB, in_pad), lambda i: (i, 0))]
    for layer in layers:
        if layer["A"] is not None:
            args.append(layer["A"])
            in_specs.append(pl.BlockSpec(layer["A"].shape, lambda i: (0, 0)))
        args.append(layer["Wt"])
        in_specs.append(pl.BlockSpec(layer["Wt"].shape, lambda i: (0, 0)))
        args.append(layer["b"])
        in_specs.append(pl.BlockSpec(layer["b"].shape, lambda i: (0, 0)))

    kernel = functools.partial(fused_mlp_kernel,
                               adaptive_flags=adaptive_flags,
                               activation=activation)
    out_pad = pl.pallas_call(
        kernel,
        out_shape=jax.ShapeDtypeStruct((B_pad, out_pad_last), jnp.float32),
        grid_spec=pltpu.PrefetchScalarGridSpec(
            num_scalar_prefetch=0,
            grid=(B_pad // TB,),
            in_specs=in_specs,
            out_specs=pl.BlockSpec((TB, out_pad_last), lambda i: (i, 0)),
        ),
        compiler_params=pltpu.CompilerParams(
            dimension_semantics=("parallel",),   # v7x: shard tiles across 2 TCs
            vmem_limit_bytes=64 * 1024 * 1024,
        ),
    )(*args)
    return out_pad[:B, :out_f]


# -----------------------------------------------------------------------------
# Pure-JAX reference (mirrors the PyTorch module exactly, unpadded).
# -----------------------------------------------------------------------------
def mlp_reference(x, params, *, activation, adaptive_rate_scaler):
    n = len(params)
    h = x
    for li, p in enumerate(params):
        if p["A"] is not None:
            h = adaptive_rate_scaler * p["A"] * h
        h = jnp.dot(h, p["W"].T, precision=jax.lax.Precision.HIGHEST) + p["b"]
        if li < n - 1:
            h = _apply_activation(h, activation)
    return h


if __name__ == "__main__":
    # MLP(sizes=[16, 32, 32, 8], activation='tanh', dropout=0.0,
    #     adaptive_rate=0.1, adaptive_rate_scaler=None -> defaults to 10.0)
    sizes = [16, 32, 32, 8]
    activation = "tanh"
    adaptive_rate = 0.1
    adaptive_rate_scaler = None

    key = jax.random.PRNGKey(0)
    key, kx = jax.random.split(key)
    batch = 8
    x = jax.random.normal(kx, (batch, sizes[0]), dtype=jnp.float32)

    params, scaler = init_mlp_params(key, sizes, adaptive_rate,
                                     adaptive_rate_scaler)
    prepared = prepare_mlp_params(params, sizes, scaler)

    out = mlp_forward(x, prepared, activation=activation)
    out = jax.block_until_ready(out)

    assert out.shape == (batch, sizes[-1])
    assert bool(jnp.all(jnp.isfinite(out)))

    ref = mlp_reference(x, params, activation=activation,
                        adaptive_rate_scaler=scaler)
    assert jnp.allclose(out, ref, rtol=1e-3, atol=1e-4), (
        float(jnp.max(jnp.abs(out - ref))))

    print("KERNEL_OK")
</pallas_src>

<mosaic_0001>
module attributes {stable_mosaic.version = 11 : i64} {
  func.func @fused_mlp_kernel(%arg0: i32, %arg1: memref<8x128xf32, #tpu.memory_space<vmem>>, %arg2: memref<1x128xf32, #tpu.memory_space<vmem>>, %arg3: memref<128x128xf32, #tpu.memory_space<vmem>>, %arg4: memref<1x128xf32, #tpu.memory_space<vmem>>, %arg5: memref<1x128xf32, #tpu.memory_space<vmem>>, %arg6: memref<128x128xf32, #tpu.memory_space<vmem>>, %arg7: memref<1x128xf32, #tpu.memory_space<vmem>>, %arg8: memref<128x128xf32, #tpu.memory_space<vmem>>, %arg9: memref<1x128xf32, #tpu.memory_space<vmem>>, %arg10: memref<8x128xf32, #tpu.memory_space<vmem>>) attributes {dimension_semantics = [#tpu.dimension_semantics<parallel>], iteration_bounds = array<i64: 1>, scalar_prefetch = 0 : i64, scratch_operands = 0 : i64, tpu.core_type = #tpu.core_type<tc>, window_params = [{transform_indices = @transform_0, window_bounds = array<i64: 8, 128>}, {pipeline_mode = #tpu.pipeline_mode<synchronous>, transform_indices = @transform_1, window_bounds = array<i64: 1, 128>}, {pipeline_mode = #tpu.pipeline_mode<synchronous>, transform_indices = @transform_2, window_bounds = array<i64: 128, 128>}, {pipeline_mode = #tpu.pipeline_mode<synchronous>, transform_indices = @transform_3, window_bounds = array<i64: 1, 128>}, {pipeline_mode = #tpu.pipeline_mode<synchronous>, transform_indices = @transform_4, window_bounds = array<i64: 1, 128>}, {pipeline_mode = #tpu.pipeline_mode<synchronous>, transform_indices = @transform_5, window_bounds = array<i64: 128, 128>}, {pipeline_mode = #tpu.pipeline_mode<synchronous>, transform_indices = @transform_6, window_bounds = array<i64: 1, 128>}, {pipeline_mode = #tpu.pipeline_mode<synchronous>, transform_indices = @transform_7, window_bounds = array<i64: 128, 128>}, {pipeline_mode = #tpu.pipeline_mode<synchronous>, transform_indices = @transform_8, window_bounds = array<i64: 1, 128>}, {transform_indices = @transform_9, window_bounds = array<i64: 8, 128>}]} {
    %c0 = arith.constant 0 : index
    %c0_0 = arith.constant 0 : index
    %0 = vector.load %arg1[%c0, %c0_0] : memref<8x128xf32, #tpu.memory_space<vmem>>, vector<8x128xf32>
    %c0_1 = arith.constant 0 : index
    %c0_2 = arith.constant 0 : index
    %1 = vector.load %arg2[%c0_1, %c0_2] : memref<1x128xf32, #tpu.memory_space<vmem>>, vector<1x128xf32>
    %2 = vector.broadcast %1 : vector<1x128xf32> to vector<8x128xf32>
    %3 = arith.mulf %0, %2 : vector<8x128xf32>
    %c0_3 = arith.constant 0 : index
    %c0_4 = arith.constant 0 : index
    %4 = vector.load %arg3[%c0_3, %c0_4] : memref<128x128xf32, #tpu.memory_space<vmem>>, vector<128x128xf32>
    %cst = arith.constant dense<0.000000e+00> : vector<8x128xf32>
    %5 = tpu.matmul %3, %4, %cst {dimension_numbers = #tpu.dot_dimension_numbers<[1], [0], [0], [1], [0, 0, 1, 1], [], []>} : vector<8x128xf32>, vector<128x128xf32>, vector<8x128xf32> -> vector<8x128xf32>
    %c0_5 = arith.constant 0 : index
    %c0_6 = arith.constant 0 : index
    %6 = vector.load %arg4[%c0_5, %c0_6] : memref<1x128xf32, #tpu.memory_space<vmem>>, vector<1x128xf32>
    %7 = vector.broadcast %6 : vector<1x128xf32> to vector<8x128xf32>
    %8 = arith.addf %5, %7 : vector<8x128xf32>
    %9 = math.tanh %8 : vector<8x128xf32>
    %c0_7 = arith.constant 0 : index
    %c0_8 = arith.constant 0 : index
    %10 = vector.load %arg5[%c0_7, %c0_8] : memref<1x128xf32, #tpu.memory_space<vmem>>, vector<1x128xf32>
    %11 = vector.broadcast %10 : vector<1x128xf32> to vector<8x128xf32>
    %12 = arith.mulf %9, %11 : vector<8x128xf32>
    %c0_9 = arith.constant 0 : index
    %c0_10 = arith.constant 0 : index
    %13 = vector.load %arg6[%c0_9, %c0_10] : memref<128x128xf32, #tpu.memory_space<vmem>>, vector<128x128xf32>
    %cst_11 = arith.constant dense<0.000000e+00> : vector<8x128xf32>
    %14 = tpu.matmul %12, %13, %cst_11 {dimension_numbers = #tpu.dot_dimension_numbers<[1], [0], [0], [1], [0, 0, 1, 1], [], []>} : vector<8x128xf32>, vector<128x128xf32>, vector<8x128xf32> -> vector<8x128xf32>
    %c0_12 = arith.constant 0 : index
    %c0_13 = arith.constant 0 : index
    %15 = vector.load %arg7[%c0_12, %c0_13] : memref<1x128xf32, #tpu.memory_space<vmem>>, vector<1x128xf32>
    %16 = vector.broadcast %15 : vector<1x128xf32> to vector<8x128xf32>
    %17 = arith.addf %14, %16 : vector<8x128xf32>
    %18 = math.tanh %17 : vector<8x128xf32>
    %c0_14 = arith.constant 0 : index
    %c0_15 = arith.constant 0 : index
    %19 = vector.load %arg8[%c0_14, %c0_15] : memref<128x128xf32, #tpu.memory_space<vmem>>, vector<128x128xf32>
    %cst_16 = arith.constant dense<0.000000e+00> : vector<8x128xf32>
    %20 = tpu.matmul %18, %19, %cst_16 {dimension_numbers = #tpu.dot_dimension_numbers<[1], [0], [0], [1], [0, 0, 1, 1], [], []>} : vector<8x128xf32>, vector<128x128xf32>, vector<8x128xf32> -> vector<8x128xf32>
    %c0_17 = arith.constant 0 : index
    %c0_18 = arith.constant 0 : index
    %21 = vector.load %arg9[%c0_17, %c0_18] : memref<1x128xf32, #tpu.memory_space<vmem>>, vector<1x128xf32>
    %22 = vector.broadcast %21 : vector<1x128xf32> to vector<8x128xf32>
    %23 = arith.addf %20, %22 : vector<8x128xf32>
    %c0_19 = arith.constant 0 : index
    %c0_20 = arith.constant 0 : index
    %24 = vector.load %arg10[%c0_19, %c0_20] : memref<8x128xf32, #tpu.memory_space<vmem>>, vector<8x128xf32>
    tpu.vector_store %arg10[%c0_19, %c0_20], %23 {strides = array<i32>} : memref<8x128xf32, #tpu.memory_space<vmem>>, vector<8x128xf32>,
    return
  }
  func.func @transform_0(%arg0: i32) -> (i32, i32) {
    %c0_i32 = arith.constant 0 : i32
    %c0_i32_0 = arith.constant 0 : i32
    return %arg0, %c0_i32 : i32, i32
  }
  func.func @transform_1(%arg0: i32) -> (i32, i32) {
    %c0_i32 = arith.constant 0 : i32
    %c0_i32_0 = arith.constant 0 : i32
    %c0_i32_1 = arith.constant 0 : i32
    return %c0_i32, %c0_i32_0 : i32, i32
  }
  func.func @transform_2(%arg0: i32) -> (i32, i32) {
    %c0_i32 = arith.constant 0 : i32
    %c0_i32_0 = arith.constant 0 : i32
    %c0_i32_1 = arith.constant 0 : i32
    return %c0_i32, %c0_i32_0 : i32, i32
  }
  func.func @transform_3(%arg0: i32) -> (i32, i32) {
    %c0_i32 = arith.constant 0 : i32
    %c0_i32_0 = arith.constant 0 : i32
    %c0_i32_1 = arith.constant 0 : i32
    return %c0_i32, %c0_i32_0 : i32, i32
  }
  func.func @transform_4(%arg0: i32) -> (i32, i32) {
    %c0_i32 = arith.constant 0 : i32
    %c0_i32_0 = arith.constant 0 : i32
    %c0_i32_1 = arith.constant 0 : i32
    return %c0_i32, %c0_i32_0 : i32, i32
  }
  func.func @transform_5(%arg0: i32) -> (i32, i32) {
    %c0_i32 = arith.constant 0 : i32
    %c0_i32_0 = arith.constant 0 : i32
    %c0_i32_1 = arith.constant 0 : i32
    return %c0_i32, %c0_i32_0 : i32, i32
  }
  func.func @transform_6(%arg0: i32) -> (i32, i32) {
    %c0_i32 = arith.constant 0 : i32
    %c0_i32_0 = arith.constant 0 : i32
    %c0_i32_1 = arith.constant 0 : i32
    return %c0_i32, %c0_i32_0 : i32, i32
  }
  func.func @transform_7(%arg0: i32) -> (i32, i32) {
    %c0_i32 = arith.constant 0 : i32
    %c0_i32_0 = arith.constant 0 : i32
    %c0_i32_1 = arith.constant 0 : i32
    return %c0_i32, %c0_i32_0 : i32, i32
  }
  func.func @transform_8(%arg0: i32) -> (i32, i32) {
    %c0_i32 = arith.constant 0 : i32
    %c0_i32_0 = arith.constant 0 : i32
    %c0_i32_1 = arith.constant 0 : i32
    return %c0_i32, %c0_i32_0 : i32, i32
  }
  func.func @transform_9(%arg0: i32) -> (i32, i32) {
    %c0_i32 = arith.constant 0 : i32
    %c0_i32_0 = arith.constant 0 : i32
    return %arg0, %c0_i32 : i32, i32
  }
}

</mosaic_0001>

<bundles_post_ra>
// kernel: tpu_custom_call.1
= control target key start
LH: loop header
LB: loop body
LE: loop exit
PB: predicated region body
PF: predicated region fallthrough
CT: control target
= control target key end

     0   :  { %14 = vsyncpa [#allocation3], 0  ;;  %s836_s0 = inlined_call_operand.hbm [shape: f32[8,128], index: 0, kind: input, shape index: {}]   ;;  %s837_s1 = inlined_call_operand.vmem [shape: f32[1,128], index: 1, kind: input, shape index: {}]   ;;  %s838_s2 = inlined_call_operand.hbm [shape: f32[128,128], index: 2, kind: input, shape index: {}]   ;;  %s839_s3 = inlined_call_operand.vmem [shape: f32[1,128], index: 3, kind: input, shape index: {}]   ;;  %s840_s4 = inlined_call_operand.vmem [shape: f32[1,128], index: 4, kind: input, shape index: {}]   ;;  %s841_s5 = inlined_call_operand.hbm [shape: f32[128,128], index: 5, kind: input, shape index: {}]   ;;  %s842_s6 = inlined_call_operand.vmem [shape: f32[1,128], index: 6, kind: input, shape index: {}]   ;;  %s843_s7 = inlined_call_operand.hbm [shape: f32[128,128], index: 7, kind: input, shape index: {}]   ;;  %s844_s8 = inlined_call_operand.vmem [shape: f32[1,128], index: 8, kind: input, shape index: {}]   ;;  %s845_s9 = inlined_call_operand.hbm [shape: f32[8,128], index: 9, kind: output, shape index: {}]  }
   0x1   :  { %15 = vsyncpa [#allocation6], 0 }
   0x2   :  { %16 = vsyncpa [#allocation9], 0 }
   0x3   :  { %17 = vsyncpa [#allocation4], 0  ;;  %s684_s30 = smov [#allocation5]  }
   0x4   :  { %s35_s10 = sshll.u32 %s684_s30, 4  ;;  %s36_s10 = int_to_ptr.vmem [resolvable:$true] %s35_s10 }
   0x5   :  { %s584_s11 = scalar_lea.vmem %s36_s10, 2048  ;;  %p589_p1 = scmp.lt.s32.totalorder %s36_s10, %s36_s10 }
   0x6   :  { %p585_p0 = scmp.ne.s32.totalorder %s36_s10, %s584_s11  ;;  %p590_p2 = scmp.lt.s32.totalorder %s584_s11, %s584_s11 }
   0x8   :  { %p591_p3 = por %p590_p2, %p589_p1 }
   0xa   :  { %p592_p4 = pnand %p591_p3, %p585_p0 }
   0xc   :  { %595 = shalt.err (!%p592_p4)
}
   0xd   :  { %s685_s12 = smov 128   ;;  %s686_s13 = smov 8  }
   0xe   :  { %41 = dma.hbm_to_vmem [thread:$0]  %s838_s2, 2048, %s36_s10, [#allocation6], %s685_s12, %s685_s12, %s686_s13  }
   0xf   :  { %s687_s16 = smov [#allocation2]   ;;  %s688_s18 = smov [#allocation7]  }
  0x10   :  { %s24_s17 = sshll.u32 %s687_s16, 4  ;;  %s51_s19 = sshll.u32 %s688_s18, 4  ;;  %s25_s17 = int_to_ptr.vmem [resolvable:$true] %s24_s17  ;;  %s52_s19 = int_to_ptr.vmem [resolvable:$true] %s51_s19 }
  0x11   :  { %s604_s20 = scalar_lea.vmem %s25_s17, 128  ;;  %p609_p6 = scmp.lt.s32.totalorder %s25_s17, %s25_s17 }
  0x12   :  { %p605_p5 = scmp.ne.s32.totalorder %s25_s17, %s604_s20  ;;  %p610_p7 = scmp.lt.s32.totalorder %s604_s20, %s604_s20 }
  0x14   :  { %p611_p8 = por %p610_p7, %p609_p6 }
  0x16   :  { %p612_p9 = pnand %p611_p8, %p605_p5 }
  0x18   :  { %615 = shalt.err (!%p612_p9)
}
  0x19   :  { %27 = dma.hbm_to_vmem [thread:$0]  %s836_s0, 128, %s25_s17, [#allocation3]  }
  0x1a   :  { %s624_s23 = scalar_lea.vmem %s52_s19, 2048  ;;  %p629_p11 = scmp.lt.s32.totalorder %s52_s19, %s52_s19 }
  0x1b   :  { %p625_p10 = scmp.ne.s32.totalorder %s52_s19, %s624_s23  ;;  %p630_p12 = scmp.lt.s32.totalorder %s624_s23, %s624_s23 }
  0x1d   :  { %p631_p13 = por %p630_p12, %p629_p11 }
  0x1f   :  { %p632_p0 = pnand %p631_p13, %p625_p10 }
  0x21   :  { %635 = shalt.err (!%p632_p0)
}
  0x22   :  { %57 = dma.hbm_to_vmem [thread:$0]  %s841_s5, 2048, %s52_s19, [#allocation6], %s685_s12, %s685_s12, %s686_s13  }
  0x23   :  { %s689_s25 = smov [#allocation8]  }
  0x24   :  { %s65_s26 = sshll.u32 %s689_s25, 4  ;;  %s66_s26 = int_to_ptr.vmem [resolvable:$true] %s65_s26 }
  0x25   :  { %s644_s27 = scalar_lea.vmem %s66_s26, 2048  ;;  %p649_p2 = scmp.lt.s32.totalorder %s66_s26, %s66_s26 }
  0x26   :  { %p645_p1 = scmp.ne.s32.totalorder %s66_s26, %s644_s27  ;;  %p650_p3 = scmp.lt.s32.totalorder %s644_s27, %s644_s27 }
  0x28   :  { %p651_p4 = por %p650_p3, %p649_p2 }
  0x2a   :  { %p652_p5 = pnand %p651_p4, %p645_p1 }
  0x2c   :  { %655 = shalt.err (!%p652_p5)
}
  0x2d   :  { %71 = dma.hbm_to_vmem [thread:$0]  %s843_s7, 2048, %s66_s26, [#allocation9], %s685_s12, %s685_s12, %s686_s13  }
  0x2e   :  { %676 = dma.done.wait [#allocation3], 128  }
  0x2f   :  { %677 = vsyncadd [#allocation3], 4294967168 }
  0x30   :  { %678 = dma.done.wait [#allocation6], 4096  }
  0x31   :  { %679 = vsyncadd [#allocation6], 4294963200 }
  0x32   :  { %680 = dma.done.wait [#allocation9], 2048  }
  0x33   :  { %681 = vsyncadd [#allocation9], 4294965248  ;;  %v690_v0 = vmov 0.0   ;;  %vm691_vm0 = vmmov 0   ;;  %v110_v1 = vld [vmem:[#allocation5 + $0x78] sm:$0xff]  ;;  %v109_v2 = vld [vmem:[#allocation5 + $0x70] sm:$0xff] }
  0x34   :  { %458 = vmatprep.subr.mxu0 %v690_v0  ;;  %490 = vmatprep.mubr.msk.f32.mxu0 %vm691_vm0, %v690_v0  ;;  %v108_v3 = vld [vmem:[#allocation5 + $0x68] sm:$0xff]  ;;  %v107_v4 = vld [vmem:[#allocation5 + $0x60] sm:$0xff]  ;;  %v106_v5 = vld [vmem:[#allocation5 + $0x58] sm:$0xff]  ;;  %s692_s13 = smov [#allocation10]  }
  0x35   :  { %493 = vmatprep.subr.mxu1 %v690_v0  ;;  %525 = vmatprep.mubr.msk.f32.mxu1 %vm691_vm0, %v690_v0  ;;  %v212_v6 = vld [vmem:[#allocation7 + $0x78] sm:$0xff]  ;;  %v211_v7 = vld [vmem:[#allocation7 + $0x70] sm:$0xff]  ;;  %v210_v9 = vld [vmem:[#allocation7 + $0x68] sm:$0xff]  ;;  %s391_s14 = sshll.u32 %s692_s13, 4  ;;  %s392_s14 = int_to_ptr.vmem [resolvable:$true] %s391_s14 }
  0x36   :  { %459 = vmatpush3.msra.mxu0 %v110_v1  ;;  %494 = vmatpush3.msra.mxu1 %v212_v6  ;;  %v105_v8 = vld [vmem:[#allocation5 + $0x50] sm:$0xff]  ;;  %v104_v10 = vld [vmem:[#allocation5 + $0x48] sm:$0xff]  ;;  %v209_v11 = vld [vmem:[#allocation7 + $0x60] sm:$0xff]  ;;  %s656_s15 = scalar_lea.vmem %s392_s14, 128  ;;  %p661_p7 = scmp.lt.s32.totalorder %s392_s14, %s392_s14 }
  0x37   :  { %460 = vmatprep.subr.mxu0 %v690_v0  ;;  %495 = vmatprep.subr.mxu1 %v690_v0  ;;  %v103_v12 = vld [vmem:[#allocation5 + $0x40] sm:$0xff]  ;;  %v208_v13 = vld [vmem:[#allocation7 + $0x58] sm:$0xff]  ;;  %v207_v15 = vld [vmem:[#allocation7 + $0x50] sm:$0xff]  ;;  %p657_p6 = scmp.ne.s32.totalorder %s392_s14, %s656_s15  ;;  %p662_p8 = scmp.lt.s32.totalorder %s656_s15, %s656_s15 }
  0x38   :  { %461 = vmatpush3.msra.mxu0 %v109_v2  ;;  %496 = vmatpush3.msra.mxu1 %v211_v7  ;;  %v102_v14 = vld [vmem:[#allocation5 + $0x38] sm:$0xff]  ;;  %v101_v16 = vld [vmem:[#allocation5 + $0x30] sm:$0xff]  ;;  %v100_v17 = vld [vmem:[#allocation5 + $0x28] sm:$0xff] }
  0x39   :  { %462 = vmatprep.subr.mxu0 %v690_v0  ;;  %497 = vmatprep.subr.mxu1 %v690_v0  ;;  %v99_v18 = vld [vmem:[#allocation5 + $0x20] sm:$0xff]  ;;  %v98_v19 = vld [vmem:[#allocation5 + $0x18] sm:$0xff]  ;;  %v97_v20 = vld [vmem:[#allocation5 + $0x10] sm:$0xff]  ;;  %p663_p9 = por %p662_p8, %p661_p7 }
  0x3a   :  { %463 = vmatpush3.msra.mxu0 %v108_v3  ;;  %498 = vmatpush3.msra.mxu1 %v210_v9  ;;  %v86_v21 = vld [vmem:[#allocation2] sm:$0xff]  ;;  %v96_v23 = vld [vmem:[#allocation5 + $0x8] sm:$0xff]  ;;  %v95_v24 = vld [vmem:[#allocation5] sm:$0xff] }
  0x3b   :  { %464 = vmatprep.subr.mxu0 %v690_v0  ;;  %499 = vmatprep.subr.mxu1 %v690_v0  ;;  %v402_v22 = vld [vmem:[%s837_s1] ss:$0 sm:$0xff]  ;;  %v206_v26 = vld [vmem:[#allocation7 + $0x48] sm:$0xff]  ;;  %v205_v27 = vld [vmem:[#allocation7 + $0x40] sm:$0xff]  ;;  %p664_p10 = pnand %p663_p9, %p657_p6 }
  0x3c   :  { %465 = vmatpush3.msra.mxu0 %v107_v4  ;;  %500 = vmatpush3.msra.mxu1 %v209_v11  ;;  %v94_v25 = vmul.f32 %v402_v22, %v86_v21  ;;  %v204_v28 = vld [vmem:[#allocation7 + $0x38] sm:$0xff]  ;;  %v203_v29 = vld [vmem:[#allocation7 + $0x30] sm:$0xff]  ;;  %v202_v30 = vld [vmem:[#allocation7 + $0x28] sm:$0xff] }
  0x3d   :  { %466 = vmatprep.subr.mxu0 %v690_v0  ;;  %501 = vmatprep.subr.mxu1 %v690_v0  ;;  %v201_v31 = vld [vmem:[#allocation7 + $0x20] sm:$0xff]  ;;  %v200_v32 = vld [vmem:[#allocation7 + $0x18] sm:$0xff]  ;;  %v199_v33 = vld [vmem:[#allocation7 + $0x10] sm:$0xff] }
  0x3e   :  { %467 = vmatpush3.msra.mxu0 %v106_v5  ;;  %502 = vmatpush3.msra.mxu1 %v208_v13  ;;  %v198_v34 = vld [vmem:[#allocation7 + $0x8] sm:$0xff]  ;;  %v197_v35 = vld [vmem:[#allocation7] sm:$0xff]  ;;  %v306_v36 = vld [vmem:[#allocation8 + $0x78] sm:$0xff] }
  0x3f   :  { %468 = vmatprep.subr.mxu0 %v690_v0  ;;  %503 = vmatprep.subr.mxu1 %v690_v0  ;;  %v305_v37 = vld [vmem:[#allocation8 + $0x70] sm:$0xff]  ;;  %v304_v38 = vld [vmem:[#allocation8 + $0x68] sm:$0xff]  ;;  %v303_v39 = vld [vmem:[#allocation8 + $0x60] sm:$0xff] }
  0x40   :  { %469 = vmatpush3.msra.mxu0 %v105_v8  ;;  %504 = vmatpush3.msra.mxu1 %v207_v15  ;;  %v302_v40 = vld [vmem:[#allocation8 + $0x58] sm:$0xff]  ;;  %v301_v41 = vld [vmem:[#allocation8 + $0x50] sm:$0xff]  ;;  %v300_v42 = vld [vmem:[#allocation8 + $0x48] sm:$0xff] }
  0x41   :  { %470 = vmatprep.subr.mxu0 %v690_v0  ;;  %505 = vmatprep.subr.mxu1 %v690_v0  ;;  %v403_v43 = vld [vmem:[%s839_s3] ss:$0 sm:$0xff]  ;;  %v299_v50 = vld [vmem:[#allocation8 + $0x40] sm:$0xff]  ;;  %v297_v52 = vld [vmem:[#allocation8 + $0x30] sm:$0xff] }
  0x42   :  { %471 = vmatpush3.msra.mxu0 %v104_v10  ;;  %506 = vmatpush3.msra.mxu1 %v206_v26  ;;  %v404_v47 = vld [vmem:[%s840_s4] ss:$0 sm:$0xff]  ;;  %v296_v53 = vld [vmem:[#allocation8 + $0x28] sm:$0xff]  ;;  %v295_v54 = vld [vmem:[#allocation8 + $0x20] sm:$0xff] }
  0x43   :  { %472 = vmatprep.subr.mxu0 %v690_v0  ;;  %507 = vmatprep.subr.mxu1 %v690_v0  ;;  %v298_v51 = vld [vmem:[#allocation8 + $0x38] sm:$0xff]  ;;  %v293_v56 = vld [vmem:[#allocation8 + $0x10] sm:$0xff]  ;;  %v292_v57 = vld [vmem:[#allocation8 + $0x8] sm:$0xff] }
  0x44   :  { %473 = vmatpush3.msra.mxu0 %v103_v12  ;;  %508 = vmatpush3.msra.mxu1 %v205_v27  ;;  %v294_v55 = vld [vmem:[#allocation8 + $0x18] sm:$0xff]  ;;  %v291_v58 = vld [vmem:[#allocation8] sm:$0xff] }
  0x45   :  { %474 = vmatprep.subr.mxu0 %v690_v0  ;;  %509 = vmatprep.subr.mxu1 %v690_v0  ;;  %v405_v59 = vld [vmem:[%s842_s6] ss:$0 sm:$0xff] }
  0x46   :  { %475 = vmatpush3.msra.mxu0 %v102_v14  ;;  %510 = vmatpush3.msra.mxu1 %v204_v28  ;;  %v406_v1 = vld [vmem:[%s844_s8] ss:$0 sm:$0xff] }
  0x47   :  { %476 = vmatprep.subr.mxu0 %v690_v0  ;;  %511 = vmatprep.subr.mxu1 %v690_v0 }
  0x48   :  { %477 = vmatpush3.msra.mxu0 %v101_v16  ;;  %512 = vmatpush3.msra.mxu1 %v203_v29 }
  0x49   :  { %478 = vmatprep.subr.mxu0 %v690_v0  ;;  %513 = vmatprep.subr.mxu1 %v690_v0 }
  0x4a   :  { %479 = vmatpush3.msra.mxu0 %v100_v17  ;;  %514 = vmatpush3.msra.mxu1 %v202_v30 }
  0x4b   :  { %480 = vmatprep.subr.mxu0 %v690_v0  ;;  %515 = vmatprep.subr.mxu1 %v690_v0 }
  0x4c   :  { %481 = vmatpush3.msra.mxu0 %v99_v18  ;;  %516 = vmatpush3.msra.mxu1 %v201_v31 }
  0x4d   :  { %482 = vmatprep.subr.mxu0 %v690_v0  ;;  %517 = vmatprep.subr.mxu1 %v690_v0 }
  0x4e   :  { %483 = vmatpush3.msra.mxu0 %v98_v19  ;;  %518 = vmatpush3.msra.mxu1 %v200_v32 }
  0x4f   :  { %484 = vmatprep.subr.mxu0 %v690_v0  ;;  %519 = vmatprep.subr.mxu1 %v690_v0 }
  0x50   :  { %485 = vmatpush3.msra.mxu0 %v97_v20  ;;  %520 = vmatpush3.msra.mxu1 %v199_v33 }
  0x51   :  { %486 = vmatprep.subr.mxu0 %v690_v0  ;;  %521 = vmatprep.subr.mxu1 %v690_v0 }
  0x52   :  { %487 = vmatpush3.msra.mxu0 %v96_v23  ;;  %522 = vmatpush3.msra.mxu1 %v198_v34 }
  0x53   :  { %488 = vmatprep.subr.mxu0 %v690_v0  ;;  %523 = vmatprep.subr.mxu1 %v690_v0 }
  0x54   :  { %489 = vmatpush3.msra.mxu0 %v95_v24  ;;  %524 = vmatpush3.msra.mxu1 %v197_v35 }
  0x55   :  { %491 = vmatmul.mubr.f32.vlgmr.msra.gmra.mxu0 %v94_v25  ;;  %528 = vmatprep.subr.mxu0 %v690_v0 }
  0x56   :  { %560 = vmatprep.mubr.msk.f32.mxu0 %vm691_vm0, %v690_v0  ;;  %529 = vmatpush3.msra.mxu0 %v306_v36 }
  0x57   :  { %530 = vmatprep.subr.mxu0 %v690_v0 }
  0x58   :  { %531 = vmatpush3.msra.mxu0 %v305_v37 }
  0x59   :  { %532 = vmatprep.subr.mxu0 %v690_v0 }
  0x5a   :  { %533 = vmatpush3.msra.mxu0 %v304_v38 }
  0x5b   :  { %534 = vmatprep.subr.mxu0 %v690_v0 }
  0x5c   :  { %535 = vmatpush3.msra.mxu0 %v303_v39 }
  0x5d   :  { %536 = vmatprep.subr.mxu0 %v690_v0 }
  0x5e   :  { %537 = vmatpush3.msra.mxu0 %v302_v40 }
  0x5f   :  { %538 = vmatprep.subr.mxu0 %v690_v0 }
  0x60   :  { %539 = vmatpush3.msra.mxu0 %v301_v41 }
  0x61   :  { %540 = vmatprep.subr.mxu0 %v690_v0 }
  0x62   :  { %541 = vmatpush3.msra.mxu0 %v300_v42 }
  0x63   :  { %542 = vmatprep.subr.mxu0 %v690_v0 }
  0x64   :  { %543 = vmatpush3.msra.mxu0 %v299_v50 }
  0x65   :  { %544 = vmatprep.subr.mxu0 %v690_v0 }
  0x66   :  { %545 = vmatpush3.msra.mxu0 %v298_v51 }
  0x67   :  { %546 = vmatprep.subr.mxu0 %v690_v0 }
  0x68   :  { %547 = vmatpush3.msra.mxu0 %v297_v52 }
  0x69   :  { %548 = vmatprep.subr.mxu0 %v690_v0 }
  0x6a   :  { %549 = vmatpush3.msra.mxu0 %v296_v53 }
  0x6b   :  { %550 = vmatprep.subr.mxu0 %v690_v0 }
  0x6c   :  { %551 = vmatpush3.msra.mxu0 %v295_v54 }
  0x6d   :  { %552 = vmatprep.subr.mxu0 %v690_v0 }
  0x6e   :  { %553 = vmatpush3.msra.mxu0 %v294_v55 }
  0x6f   :  { %554 = vmatprep.subr.mxu0 %v690_v0 }
  0x70   :  { %555 = vmatpush3.msra.mxu0 %v293_v56 }
  0x71   :  { %556 = vmatprep.subr.mxu0 %v690_v0 }
  0x72   :  { %557 = vmatpush3.msra.mxu0 %v292_v57 }
  0x73   :  { %558 = vmatprep.subr.mxu0 %v690_v0 }
  0x74   :  { %559 = vmatpush3.msra.mxu0 %v291_v58 }
 0x115   :  { %v184_v44 = vpop.f32.mrf.mxu0 }
 0x116   :  { %v185_v45 = vadd.f32 %v403_v43, %v184_v44 }
 0x117   :  { %v492_v46 = vpop.f32.mrf.mxu0 }
 0x118   :  { %572 = vtanh.f32 %v185_v45 }
 0x125   :  { %v573_v48 = vpop.eup %572 }
 0x126   :  { %v196_v49 = vmul.f32 %v573_v48, %v404_v47 }
 0x128   :  { %526 = vmatmul.mubr.f32.vlgmr.msra.gmra.mxu1 %v196_v49 }
 0x1e8   :  { %v286_v60 = vpop.f32.mrf.mxu1 }
 0x1e9   :  { %v287_v61 = vadd.f32 %v405_v59, %v286_v60 }
 0x1ea   :  { %v527_v62 = vpop.f32.mrf.mxu1 }
 0x1eb   :  { %574 = vtanh.f32 %v287_v61 }
 0x1f8   :  { %v575_v63 = vpop.eup %574 }
 0x1f9   :  { %561 = vmatmul.mubr.f32.vlgmr.msra.gmra.mxu0 %v575_v63 }
 0x2b9   :  { %v380_v2 = vpop.f32.mrf.mxu0 }
 0x2ba   :  { %v381_v3 = vadd.f32 %v406_v1, %v380_v2 }
 0x2bb   :  { %v562_v0 = vpop.f32.mrf.mxu0 }
 0x2bc   :  { %384 = vst [vmem:[#allocation10] sm:$0xff] %v381_v3 }
 0x2bd   :  { %667 = shalt.err (!%p664_p10)
}
 0x2be   :  { %394 = dma.vmem_to_hbm [thread:$0]  %s392_s14, 128, %s845_s9, [#allocation4]  }
 0x2bf   :  { %682 = dma.done.wait [#allocation4], 128  }
 0x2c0   :  { %683 = vsyncadd [#allocation4], 4294967168 }
 0x2c1   :  { %398 = vsyncpa [#allocation3], 1 }
 0x2c2   :  { %399 = vsyncpa [#allocation6], 1 }
 0x2c3   :  { %400 = vsyncpa [#allocation9], 1 }
 0x2c4   :  { %401 = vsyncpa [#allocation4], 1 }

</bundles_post_ra>
